<compile_context>
chip_gen: v7x
topology: tpu7x:2x2x1
jax: 0.10.0
libtpu: 0.0.40
codegen_flags: <defaults>
</compile_context>

<pallas_src>
import functools

import jax
import jax.numpy as jnp
import numpy as np
from jax.experimental import pallas as pl
from jax.experimental.pallas import tpu as pltpu


# --------------------------------------------------------------------------
# Kernels
# --------------------------------------------------------------------------
def _concat_end_kernel(prefix_ref, ctx_ref, suffix_ref, out_ref, *, n_ctx):
    """class_token_position == 'end': out = [prefix | ctx | suffix] along tokens.

    prefix_ref: (C_BLK, 1,     D)
    ctx_ref:    (C_BLK or 1, n_ctx, D)   (leading dim 1 => shared/generic ctx)
    suffix_ref: (C_BLK, n_suf, D)
    out_ref:    (C_BLK, L,     D)
    Three static lane-dense slab stores per grid step (D multiple of 128 =>
    unmasked along lanes).
    """
    c_blk = out_ref.shape[0]
    out_ref[:, 0:1, :] = prefix_ref[...].astype(out_ref.dtype)
    ctx_b = ctx_ref[...]
    if ctx_b.shape[0] != c_blk:                       # generic ctx: broadcast
        ctx_b = jnp.broadcast_to(ctx_b, (c_blk,) + ctx_b.shape[1:])
    out_ref[:, 1:1 + n_ctx, :] = ctx_b.astype(out_ref.dtype)
    out_ref[:, 1 + n_ctx:, :] = suffix_ref[...].astype(out_ref.dtype)


def _perm_matmul_kernel(prefix_ref, ctx_ref, suffix_ref, onehot_ref, out_ref,
                        stack_ref, *, n_ctx):
    """class_token_position in {'middle','front'}.

    onehot_ref: (C_BLK, L, L) one-hot permutation matrices (host-built from
                name_lens).  out[c] = onehot[c] @ [prefix_c ; ctx_c ; suffix_c]
                -- one batched MXU matmul replaces the per-row gather loop.
    stack_ref:  (C_BLK, L, D) VMEM scratch holding the stacked source rows.
    """
    c_blk = out_ref.shape[0]

    # Build the stacked source slab for these classes.
    stack_ref[:, 0:1, :] = prefix_ref[...].astype(stack_ref.dtype)
    ctx_b = ctx_ref[...]
    if ctx_b.shape[0] != c_blk:                       # generic ctx: broadcast
        ctx_b = jnp.broadcast_to(ctx_b, (c_blk,) + ctx_b.shape[1:])
    stack_ref[:, 1:1 + n_ctx, :] = ctx_b.astype(stack_ref.dtype)
    stack_ref[:, 1 + n_ctx:, :] = suffix_ref[...].astype(stack_ref.dtype)

    # Row permutation as a batched matmul on the MXU.  Each output row is
    # exactly one source row (one-hot weights), so this is numerically a copy.
    out = jnp.einsum("cts,csd->ctd", onehot_ref[...], stack_ref[...],
                     preferred_element_type=jnp.float32)
    out_ref[...] = out.astype(out_ref.dtype)


# --------------------------------------------------------------------------
# Host-side permutation / one-hot tables (mirror the PyTorch middle/front loops)
# --------------------------------------------------------------------------
def _build_perm(n_cls, n_ctx, n_suffix, name_lens, position):
    seq_len = 1 + n_ctx + n_suffix
    half = n_ctx // 2
    perm = np.zeros((n_cls, seq_len), np.int32)
    for i in range(n_cls):
        nl = int(name_lens[i])
        if position == "middle":
            order = ([0]
                     + list(range(1, 1 + half))                       # ctx half 1
                     + list(range(1 + n_ctx, 1 + n_ctx + nl))         # class tokens
                     + list(range(1 + half, 1 + n_ctx))               # ctx half 2
                     + list(range(1 + n_ctx + nl, seq_len)))          # rest of suffix
        elif position == "front":
            order = ([0]
                     + list(range(1 + n_ctx, 1 + n_ctx + nl))         # class tokens
                     + list(range(1, 1 + n_ctx))                      # ctx
                     + list(range(1 + n_ctx + nl, seq_len)))          # rest of suffix
        else:
            raise ValueError(position)
        perm[i] = np.asarray(order, np.int32)
    return perm


def _build_onehot(n_cls, n_ctx, n_suffix, name_lens, position, dtype):
    perm = _build_perm(n_cls, n_ctx, n_suffix, name_lens, position)
    seq_len = 1 + n_ctx + n_suffix
    eye = np.eye(seq_len, dtype=np.float32)
    onehot = eye[perm]                     # (n_cls, L, L); row t is e_{perm[t]}
    return jnp.asarray(onehot, dtype=dtype)


# --------------------------------------------------------------------------
# Class-block sizing (VMEM budget + keep >=2 grid steps for megacore)
# --------------------------------------------------------------------------
def _pick_class_block(n_cls, per_class_bytes, vmem_budget_bytes=8 << 20):
    # Double-buffered in+out blocks should stay within a conservative budget
    # (v5e default scoped VMEM is only 16 MiB; v7x has 64 MiB physical).
    cap = max(1, vmem_budget_bytes // max(1, 2 * per_class_bytes))
    if n_cls >= 2:
        cap = min(cap, max(1, n_cls // 2))   # >= 2 grid steps on the parallel axis
    cap = min(cap, n_cls)
    best = 1
    for c in range(1, cap + 1):              # largest divisor of n_cls <= cap
        if n_cls % c == 0:
            best = c
    return best


# --------------------------------------------------------------------------
# Wrapper (equivalent of PromptLearner.forward)
# --------------------------------------------------------------------------
def prompt_learner_forward(ctx, token_prefix, token_suffix, name_lens,
                           class_token_position="end", timesteps=0):
    """Assemble prompt embeddings.

    ctx:           (n_ctx, D) generic context or (n_cls, n_ctx, D) class-specific.
    token_prefix:  (n_cls, 1, D)
    token_suffix:  (n_cls, n_suf, D)
    Returns (n_cls, 1 + n_ctx + n_suf, D).
    """
    del timesteps  # unused, as in the PyTorch module
    n_cls, _, d = token_prefix.shape
    n_suf = token_suffix.shape[1]
    dtype = token_prefix.dtype
    itemsize = jnp.dtype(dtype).itemsize

    if ctx.ndim == 2:
        n_ctx = ctx.shape[0]
        ctx_in = ctx.reshape(1, n_ctx, d)      # generic: block 0 reused every step
        generic_ctx = True
    else:
        n_ctx = ctx.shape[1]
        ctx_in = ctx
        generic_ctx = False

    seq_len = 1 + n_ctx + n_suf
    out_shape = jax.ShapeDtypeStruct((n_cls, seq_len, d), dtype)

    if class_token_position == "end":
        per_class_bytes = 2 * seq_len * d * itemsize
    elif class_token_position in ("middle", "front"):
        per_class_bytes = (3 * seq_len * d + seq_len * seq_len) * itemsize
    else:
        raise ValueError(class_token_position)

    c_blk = _pick_class_block(n_cls, per_class_bytes)
    grid = (n_cls // c_blk,)

    ctx_block = (1 if generic_ctx else c_blk, n_ctx, d)
    ctx_map = (lambda b: (0, 0, 0)) if generic_ctx else (lambda b: (b, 0, 0))

    if class_token_position == "end":
        cost = pl.CostEstimate(
            flops=0, transcendentals=0,
            bytes_accessed=2 * n_cls * seq_len * d * itemsize)
        return pl.pallas_call(
            functools.partial(_concat_end_kernel, n_ctx=n_ctx),
            out_shape=out_shape,
            grid_spec=pltpu.PrefetchScalarGridSpec(
                num_scalar_prefetch=0,
                grid=grid,
                in_specs=[
                    pl.BlockSpec((c_blk, 1, d), lambda b: (b, 0, 0)),
                    pl.BlockSpec(ctx_block, ctx_map),
                    pl.BlockSpec((c_blk, n_suf, d), lambda b: (b, 0, 0)),
                ],
                out_specs=pl.BlockSpec((c_blk, seq_len, d),
                                       lambda b: (b, 0, 0)),
            ),
            compiler_params=pltpu.CompilerParams(
                dimension_semantics=("parallel",)),
            cost_estimate=cost,
        )(token_prefix, ctx_in, token_suffix)

    # -------------------- middle / front --------------------
    try:
        name_lens = [int(x) for x in name_lens]
    except Exception as e:  # traced / non-concrete values
        raise ValueError(
            "name_lens must be static (concrete) Python integers for "
            "class_token_position in {'middle','front'}.") from e

    onehot = _build_onehot(n_cls, n_ctx, n_suf, name_lens,
                           class_token_position, dtype)
    cost = pl.CostEstimate(
        flops=2 * n_cls * seq_len * seq_len * d,
        transcendentals=0,
        bytes_accessed=(2 * n_cls * seq_len * d
                        + n_cls * seq_len * seq_len) * itemsize)
    return pl.pallas_call(
        functools.partial(_perm_matmul_kernel, n_ctx=n_ctx),
        out_shape=out_shape,
        grid_spec=pltpu.PrefetchScalarGridSpec(
            num_scalar_prefetch=0,
            grid=grid,
            in_specs=[
                pl.BlockSpec((c_blk, 1, d), lambda b: (b, 0, 0)),
                pl.BlockSpec(ctx_block, ctx_map),
                pl.BlockSpec((c_blk, n_suf, d), lambda b: (b, 0, 0)),
                pl.BlockSpec((c_blk, seq_len, seq_len), lambda b: (b, 0, 0)),
            ],
            out_specs=pl.BlockSpec((c_blk, seq_len, d), lambda b: (b, 0, 0)),
            scratch_shapes=[pltpu.VMEM((c_blk, seq_len, d), dtype)],
        ),
        compiler_params=pltpu.CompilerParams(
            dimension_semantics=("parallel",)),
        cost_estimate=cost,
    )(token_prefix, ctx_in, token_suffix, onehot)


# --------------------------------------------------------------------------
# Pure-JAX reference mirroring the PyTorch forward
# --------------------------------------------------------------------------
def _reference(ctx, prefix, suffix, name_lens, position):
    n_cls = prefix.shape[0]
    if ctx.ndim == 2:
        ctx = jnp.broadcast_to(ctx[None], (n_cls,) + ctx.shape)
    n_ctx = ctx.shape[1]
    if position == "end":
        return jnp.concatenate([prefix, ctx, suffix], axis=1)
    half = n_ctx // 2
    prompts = []
    for i in range(n_cls):
        nl = int(name_lens[i])
        if position == "middle":
            parts = [prefix[i:i + 1],
                     ctx[i:i + 1, :half],
                     suffix[i:i + 1, :nl],
                     ctx[i:i + 1, half:],
                     suffix[i:i + 1, nl:]]
        elif position == "front":
            parts = [prefix[i:i + 1],
                     suffix[i:i + 1, :nl],
                     ctx[i:i + 1],
                     suffix[i:i + 1, nl:]]
        else:
            raise ValueError(position)
        prompts.append(jnp.concatenate(parts, axis=1))
    return jnp.concatenate(prompts, axis=0)


if __name__ == "__main__":
    key = jax.random.PRNGKey(0)
    k1, k2, k3, k4 = jax.random.split(key, 4)

    # Small shapes consistent with the module: n_cls classes, n_ctx context
    # tokens, ctx_dim hidden width, seq_len total prompt length.
    n_cls, n_ctx, d = 4, 8, 128
    n_suf = 23                       # class-name tokens + EOS + padding
    seq_len = 1 + n_ctx + n_suf      # 32

    token_prefix = jax.random.normal(k1, (n_cls, 1, d), jnp.float32)
    token_suffix = jax.random.normal(k2, (n_cls, n_suf, d), jnp.float32)
    ctx_generic = 0.02 * jax.random.normal(k3, (n_ctx, d), jnp.float32)
    ctx_csc = 0.02 * jax.random.normal(k4, (n_cls, n_ctx, d), jnp.float32)
    name_lens = [1, 2, 3, 5]

    # Generic (shared) and class-specific (CSC) contexts, all token positions.
    for ctx_arr in (ctx_generic, ctx_csc):
        for pos in ("end", "middle", "front"):
            out = prompt_learner_forward(ctx_arr, token_prefix, token_suffix,
                                         name_lens, pos)
            out = jax.block_until_ready(out)
            ref = _reference(ctx_arr, token_prefix, token_suffix, name_lens, pos)
            assert out.shape == (n_cls, seq_len, d)
            np.testing.assert_allclose(np.asarray(out), np.asarray(ref),
                                       rtol=1e-6, atol=1e-6)

    print("KERNEL_OK")
</pallas_src>

<mosaic_0001>
module attributes {stable_mosaic.version = 11 : i64} {
  func.func @_concat_end_kernel(%arg0: i32, %arg1: memref<2x1x128xf32, #tpu.memory_space<vmem>>, %arg2: memref<1x8x128xf32, #tpu.memory_space<vmem>>, %arg3: memref<2x23x128xf32, #tpu.memory_space<vmem>>, %arg4: memref<2x32x128xf32, #tpu.memory_space<vmem>>) attributes {dimension_semantics = [#tpu.dimension_semantics<parallel>], iteration_bounds = array<i64: 2>, scalar_prefetch = 0 : i64, scratch_operands = 0 : i64, tpu.core_type = #tpu.core_type<tc>, window_params = [{transform_indices = @transform_0, window_bounds = array<i64: 2, 1, 128>}, {pipeline_mode = #tpu.pipeline_mode<synchronous>, transform_indices = @transform_1, window_bounds = array<i64: 1, 8, 128>}, {transform_indices = @transform_2, window_bounds = array<i64: 2, 23, 128>}, {transform_indices = @transform_3, window_bounds = array<i64: 2, 32, 128>}]} {
    %c0 = arith.constant 0 : index
    %c0_0 = arith.constant 0 : index
    %c0_1 = arith.constant 0 : index
    %0 = vector.load %arg1[%c0, %c0_0, %c0_1] : memref<2x1x128xf32, #tpu.memory_space<vmem>>, vector<2x1x128xf32>
    %c0_2 = arith.constant 0 : index
    %c0_3 = arith.constant 0 : index
    %c0_4 = arith.constant 0 : index
    %1 = vector.load %arg4[%c0_2, %c0_3, %c0_4] : memref<2x32x128xf32, #tpu.memory_space<vmem>>, vector<2x1x128xf32>
    tpu.vector_store %arg4[%c0_2, %c0_3, %c0_4], %0 {strides = array<i32>} : memref<2x32x128xf32, #tpu.memory_space<vmem>>, vector<2x1x128xf32>,
    %c0_5 = arith.constant 0 : index
    %c0_6 = arith.constant 0 : index
    %c0_7 = arith.constant 0 : index
    %2 = vector.load %arg2[%c0_5, %c0_6, %c0_7] : memref<1x8x128xf32, #tpu.memory_space<vmem>>, vector<1x8x128xf32>
    %3 = vector.shape_cast %2 : vector<1x8x128xf32> to vector<1x8x128xf32>
    %4 = vector.broadcast %3 : vector<1x8x128xf32> to vector<2x8x128xf32>
    %c0_8 = arith.constant 0 : index
    %c1 = arith.constant 1 : index
    %c0_9 = arith.constant 0 : index
    %5 = vector.load %arg4[%c0_8, %c1, %c0_9] : memref<2x32x128xf32, #tpu.memory_space<vmem>>, vector<2x8x128xf32>
    tpu.vector_store %arg4[%c0_8, %c1, %c0_9], %4 {strides = array<i32>} : memref<2x32x128xf32, #tpu.memory_space<vmem>>, vector<2x8x128xf32>,
    %c0_10 = arith.constant 0 : index
    %c0_11 = arith.constant 0 : index
    %c0_12 = arith.constant 0 : index
    %6 = vector.load %arg3[%c0_10, %c0_11, %c0_12] : memref<2x23x128xf32, #tpu.memory_space<vmem>>, vector<2x23x128xf32>
    %c0_13 = arith.constant 0 : index
    %c9 = arith.constant 9 : index
    %c0_14 = arith.constant 0 : index
    %7 = vector.load %arg4[%c0_13, %c9, %c0_14] : memref<2x32x128xf32, #tpu.memory_space<vmem>>, vector<2x23x128xf32>
    tpu.vector_store %arg4[%c0_13, %c9, %c0_14], %6 {strides = array<i32>} : memref<2x32x128xf32, #tpu.memory_space<vmem>>, vector<2x23x128xf32>,
    return
  }
  func.func @transform_0(%arg0: i32) -> (i32, i32, i32) {
    %c0_i32 = arith.constant 0 : i32
    %c0_i32_0 = arith.constant 0 : i32
    %c0_i32_1 = arith.constant 0 : i32
    return %arg0, %c0_i32, %c0_i32_0 : i32, i32, i32
  }
  func.func @transform_1(%arg0: i32) -> (i32, i32, i32) {
    %c0_i32 = arith.constant 0 : i32
    %c0_i32_0 = arith.constant 0 : i32
    %c0_i32_1 = arith.constant 0 : i32
    %c0_i32_2 = arith.constant 0 : i32
    return %c0_i32, %c0_i32_0, %c0_i32_1 : i32, i32, i32
  }
  func.func @transform_2(%arg0: i32) -> (i32, i32, i32) {
    %c0_i32 = arith.constant 0 : i32
    %c0_i32_0 = arith.constant 0 : i32
    %c0_i32_1 = arith.constant 0 : i32
    return %arg0, %c0_i32, %c0_i32_0 : i32, i32, i32
  }
  func.func @transform_3(%arg0: i32) -> (i32, i32, i32) {
    %c0_i32 = arith.constant 0 : i32
    %c0_i32_0 = arith.constant 0 : i32
    %c0_i32_1 = arith.constant 0 : i32
    return %arg0, %c0_i32, %c0_i32_0 : i32, i32, i32
  }
}

</mosaic_0001>

<bundles_post_ra>
// kernel: tpu_custom_call.1
= control target key start
LH: loop header
LB: loop body
LE: loop exit
PB: predicated region body
PF: predicated region fallthrough
CT: control target
= control target key end

     0   :  { %8 = vsyncpa [#allocation3], 0  ;;  %s556_s0 = inlined_call_operand.vmem [shape: f32[4,1,128], index: 0, kind: input, shape index: {}]   ;;  %s557_s1 = inlined_call_operand.vmem [shape: f32[1,8,128], index: 1, kind: input, shape index: {}]   ;;  %s558_s2 = inlined_call_operand.vmem [shape: f32[4,23,128], index: 2, kind: input, shape index: {}]   ;;  %s559_s3 = inlined_call_operand.hbm [shape: f32[4,32,128], index: 3, kind: output, shape index: {}]  }
   0x1   :  { %10 = vsyncpa [#allocation3 + $0x1], 0  ;;  %s444_s12 = smov 0   ;;  %s446_s13 = smov 0  }
   0x2   :  { %s448_s14 = smov 0   ;;  %s450_s15 = smov 0  }
   0x3 LB: > { %s465_s16 = sadd.s32 4294967295, %s419_s15   ;;  %s299_s17 = sadd.s32 4294967294, %s419_s15   ;;  %s419_s15 = sphi %s450_s15, %s565_s15   ;;  %s415_s14 = sphi %s448_s14, %s564_s14   ;;  %s411_s13 = sphi %s446_s13, %s563_s13   ;;  %s407_s12 = sphi %s444_s12, %s562_s12  }
   0x4   : > { %s469_s18 = sadd.s32 1, %s419_s15   ;;  %s96_s19 = sadd.s32 1, %s415_s14 }
   0x5   : > { %s93_s20 = ssub.s32 %s419_s15, %s469_s18  ;;  %p106_p0 = scmp.ne.s32.totalorder %s415_s14, %s411_s13 }
   0x6   : > { %p94_p1 = scmp.eq.s32.totalorder %s93_s20, 0  ;;  %p107_p2 = scmp.eq.s32.totalorder %s465_s16, 1 }
   0x7   : > { %p112_p3 = scmp.ne.s32.totalorder %s411_s13, %s407_s12  ;;  %p113_p4 = scmp.eq.s32.totalorder %s299_s17, 1 }
   0x8   : > { %s480_s21 = scalar_select %p94_p1, %s415_s14, %s96_s19  }
   0x9   : > { %p482_p5 = por %p107_p2, %p106_p0  ;;  %p486_p6 = por %p113_p4, %p112_p3 }
   0xa   : > { %p302_p7 = scmp.ge.s32.totalorder %s419_s15, 1  ;;  %p152_p8 = scmp.lt.s32.totalorder %s419_s15, 3 }
   0xc   : > { %p153_p9 = pnand %p302_p7, %p152_p8 }
   0xd   : > { %s178_s24 = sand.u32 (!%p153_p9), 1, %s411_s13   ;;  %s304_s25 = sshll.u32 (!%p153_p9), %s465_s16, 1  ;;  %v198_v0 = vld [vmem:[%s557_s1] sm:$0xff] (!%p153_p9) }
   0xe   : > { %156 = sbr.rel (%p153_p9) target bundleno = 46 (0x2e), region = 32  ;;  %s303_s28 = sshll.u32 (!%p153_p9), %s178_s24, 6 }
   0xf   : > { %p182_p10 = scmp.lt.s32.totalorder (!%p153_p9), %s304_s25, 3  ;;  %s180_s29 = scalar_lea.vmem (!%p153_p9), [#allocation2], %s303_s28 }
  0x10   : > { %199 = vst [vmem:[%s180_s29 + $0x1] sm:$0xff] (!%p153_p9), %v198_v0  ;;  %200 = vst [vmem:[%s180_s29 + $0x21] sm:$0xff] (!%p153_p9), %v198_v0  ;;  %s314_s30 = sshll.u32 (!%p153_p9), %s465_s16, 10  ;;  %s228_s4 = sshll.u32 (!%p153_p9), %s180_s29, 4  ;;  %s511_s4 = int_to_ptr.vmem [resolvable:$true] %s228_s4 }
  0x11   : > { %s506_s11 = scalar_lea.hbm (!%p153_p9), %s559_s3, %s314_s30  ;;  %s515_s16 = scalar_lea.sflag (!%p153_p9), [#allocation3], %s178_s24 }
  0x12   : > { %s421_s26 = smov (!%p153_p9), [#allocation2]  }
  0x13   : > { %s361_s27 = sshll.u32 (!%p153_p9), %s421_s26, 4  ;;  %s362_s27 = int_to_ptr.vmem [resolvable:$false] %s361_s27 }
  0x14   : > { %s363_s28 = scalar_lea.vmem (!%p153_p9), %s362_s27, 2048  ;;  %p364_p0 = scmp.lt.s32.totalorder (!%p153_p9), %s511_s4, %s362_s27 }
  0x15   : > { %s567_s25 = smov (!%p182_p10, %s304_s25), 3 }
  0x16   : > { %s184_s7 = scalar_lea.vmem %s556_s0, %s567_s25  ;;  %s315_s8 = smul.u32 24, %s567_s25 }
  0x17   : > { %v194_v1 = vld [vmem:[%s184_s7] sm:$0x1]  ;;  %v195_v2 = vld [vmem:[%s184_s7 + $0x1] sm:$0x1]  ;;  %s357_s25 = scalar_lea.vmem %s511_s4, 1024 }
  0x18   : > { %s191_s20 = scalar_lea.vmem %s558_s2, %s315_s8  ;;  %196 = vst [vmem:[%s180_s29] sm:$0x1] %v194_v1  ;;  %197 = vst [vmem:[%s180_s29 + $0x20] sm:$0x1] %v195_v2  ;;  %p358_p11 = scmp.ne.s32.totalorder %s511_s4, %s357_s25 }
  0x19   : > { %v201_v3 = vld [vmem:[%s191_s20] sm:$0xff]  ;;  %v202_v4 = vld [vmem:[%s191_s20 + $0x8] sm:$0xff]  ;;  %v203_v5 = vld [vmem:[%s191_s20 + $0x10] sm:$0x7f]  ;;  %p365_p1 = scmp.lt.s32.totalorder %s363_s28, %s357_s25 }
  0x1a   : > { %207 = vst [vmem:[%s180_s29 + $0x9] sm:$0xff] %v201_v3  ;;  %208 = vst [vmem:[%s180_s29 + $0x11] sm:$0xff] %v202_v4  ;;  %v204_v6 = vld [vmem:[%s191_s20 + $0x18] sm:$0xff]  ;;  %v205_v7 = vld [vmem:[%s191_s20 + $0x20] sm:$0xff]  ;;  %p359_p12 = pnand %p358_p11, %p482_p5 }
  0x1b   : > { %209 = vst [vmem:[%s180_s29 + $0x19] sm:$0x7f] %v203_v5  ;;  %v206_v8 = vld [vmem:[%s191_s20 + $0x28] sm:$0x7f]  ;;  %210 = vst [vmem:[%s180_s29 + $0x29] sm:$0xff] %v204_v6  ;;  %p366_p2 = por %p365_p1, %p364_p0 }
  0x1c   : > { %211 = vst [vmem:[%s180_s29 + $0x31] sm:$0xff] %v205_v7  ;;  %212 = vst [vmem:[%s180_s29 + $0x39] sm:$0x7f] %v206_v8  ;;  %p360_p13 = pneg %p359_p12 }
  0x1e   : > { %p367_p3 = pnand %p366_p2, %p360_p13 }
  0x20   : > { %370 = shalt.err (!%p367_p3)
}
  0x21   : > { %s371_s24 = scalar_lea.hbm %s506_s11, 1024  ;;  %s375_s5 = scalar_lea.hbm %s559_s3, 2048 }
  0x22   : > { %p372_p4 = scmp.ne.s32.totalorder %s506_s11, %s371_s24  ;;  %p376_p9 = scmp.lt.u32.totalorder %s506_s11, %s559_s3 }
  0x23   : > { %p377_p10 = scmp.lt.u32.totalorder %s375_s5, %s371_s24  ;;  %p379_p12 = scmp.lt.u32.totalorder %s371_s24, %s506_s11 }
  0x24   : > { %p373_p7 = pnand %p372_p4, %p482_p5 }
  0x25   : > { %p378_p11 = por %p377_p10, %p376_p9 }
  0x26   : > { %p374_p8 = pneg %p373_p7 }
  0x27   : > { %p380_p13 = por %p379_p12, %p378_p11 }
  0x29   : > { %p381_p0 = pnand %p380_p13, %p374_p8 }
  0x2b   : > { %384 = shalt.err (!%p381_p0)
}
  0x2c   : > { %s422_s8 = smov 128   ;;  %s423_s9 = smov 8  }
  0x2d   : > { %316 = dma.vmem_to_hbm [thread:$0]  (%p482_p5), %s511_s4, 1024, %s506_s11, %s515_s16, %s422_s8, %s422_s8, %s423_s9  }
  0x2e PF: > { %p322_p1 = scmp.ge.s32.totalorder %s419_s15, 2  ;;  %s243_s10 = sand.u32 1, %s407_s12  }
  0x2f   : > { %s244_s17 = scalar_lea.sflag [#allocation3], %s243_s10 }
  0x30   : > { %p319_p2 = pnand %p322_p1, %p486_p6 }
  0x32   : > { %402 = dma.done.wait (!%p319_p2), %s244_s17, 1024  }
  0x33   : > { %404 = vsyncadd (!%p319_p2), %s244_s17, 4294966272  ;;  %p13_p3 = scmp.ge.s32.totalorder %s469_s18, 4   ;;  %s562_s12 = smov %s411_s13 }
  0x34   : > { %s563_s13 = smov %s415_s14  ;;  %s564_s14 = smov %s480_s21 }
  0x35   : > { %s565_s15 = smov %s469_s18  ;;  %15 = sbr.rel (!%p13_p3) target bundleno = 3 (0x3), region = 70 }
  0x3c   :  { %249 = vsyncpa [#allocation3], 1 }
  0x3d   :  { %251 = vsyncpa [#allocation3 + $0x1], 1 }

</bundles_post_ra>
